<compile_context>
chip_gen: v5e
topology: v5e:2x2
jax: 0.10.0
libtpu: 0.0.40
codegen_flags: <defaults>
</compile_context>

<pallas_src>
import functools

import jax
import jax.numpy as jnp
from jax import lax
from jax.experimental import pallas as pl
from jax.experimental.pallas import tpu as pltpu


def _round_up(a: int, m: int) -> int:
    return ((a + m - 1) // m) * m


def _cdiv(a: int, b: int) -> int:
    return -(-a // b)


# --------------------------------------------------------------------------- #
# Kernel
# --------------------------------------------------------------------------- #
def _ffn_kernel(x_ref, w1_ref, b1_ref, w2_ref, b2_ref, o_ref, xn_ref, acc_ref,
                *, eps, compute_dtype, approximate_gelu):
    """Grid = (row tiles [parallel], H chunks [arbitrary]).

    Per row tile: LayerNorm once (hc==0), then per H chunk
    h = GELU(xn @ w1_chunk + b1_chunk); acc += h @ w2_chunk; write out at the
    last chunk with bias + residual.
    """
    hc = pl.program_id(1)

    @pl.when(hc == 0)
    def _():
        # LayerNorm (gamma/beta are folded into w1/b1 by the wrapper).
        # NOTE: zero-padded rows have var == 0, so xn == 0 * rsqrt(eps) == 0
        # (finite); they are sliced off in the wrapper -- do NOT mask here.
        xf = x_ref[...].astype(jnp.float32)
        mean = jnp.mean(xf, axis=-1, keepdims=True)
        xc = xf - mean
        var = jnp.mean(xc * xc, axis=-1, keepdims=True)
        xn_ref[...] = (xc * lax.rsqrt(var + eps)).astype(compute_dtype)
        acc_ref[...] = jnp.zeros_like(acc_ref)

    # ---- Linear1 chunk (D -> th): low-precision operands, f32 MXU accum ----
    h = jnp.dot(xn_ref[...], w1_ref[...], preferred_element_type=jnp.float32)
    h = h + b1_ref[...]

    # ---- GELU ----
    if approximate_gelu:
        # tanh form: transcendental goes to the EUP slot (the erf polynomial
        # would saturate the VALU slot on v6e/v7x while the MXU idles).
        c = 0.7978845608028654  # sqrt(2/pi)
        h = 0.5 * h * (1.0 + jnp.tanh(c * (h + 0.044715 * (h * h * h))))
    else:
        # Exact erf -- matches nn.GELU default.
        h = 0.5 * h * (1.0 + lax.erf(h * 0.7071067811865476))

    # TODO(synk): Dropout omitted (eval mode / p == 0) -- identity.

    # ---- Linear2 chunk (th -> D), accumulated in f32 ----
    acc_ref[...] += jnp.dot(h.astype(compute_dtype), w2_ref[...],
                            preferred_element_type=jnp.float32)

    @pl.when(hc == pl.num_programs(1) - 1)
    def _():
        # Residual: re-read x from VMEM instead of keeping an f32 copy live
        # across both matmuls.
        o_ref[...] = (acc_ref[...] + b2_ref[...]
                      + x_ref[...].astype(jnp.float32)).astype(o_ref.dtype)


# --------------------------------------------------------------------------- #
# Builders / host-side helpers
# --------------------------------------------------------------------------- #
@functools.lru_cache(maxsize=None)
def _buffered1_supported() -> bool:
    """Probe pl.Buffered(1) once on a tiny copy kernel.

    Avoids a broad try/except around the real kernel (which could swallow
    genuine errors or execute the FFN twice on failure)."""
    try:
        spec = pl.BlockSpec((8, 128), lambda i: (0, 0),
                            pipeline_mode=pl.Buffered(1))

        def _copy(x_ref, o_ref):
            o_ref[...] = x_ref[...] + 1.0

        fn = pl.pallas_call(
            _copy,
            out_shape=jax.ShapeDtypeStruct((8, 128), jnp.float32),
            grid_spec=pltpu.PrefetchScalarGridSpec(
                num_scalar_prefetch=0, grid=(1,),
                in_specs=[spec],
                out_specs=pl.BlockSpec((8, 128), lambda i: (0, 0))),
        )
        jax.block_until_ready(fn(jnp.zeros((8, 128), jnp.float32)))
        return True
    except Exception:  # probe only -- the real kernel is never retried
        return False


def _default_vmem_limit_bytes() -> int:
    # Raise the scoped-VMEM limit above the 16/32 MiB defaults, but keep
    # headroom below physical VMEM (128 MiB v5e/v6e, 64 MiB per TC on v7x).
    try:
        phys = int(pltpu.get_tpu_info().vmem_capacity_bytes)
    except Exception:
        phys = 64 * 1024 * 1024
    return max(32 * 1024 * 1024,
               min(phys - 16 * 1024 * 1024, 112 * 1024 * 1024))


def _vmem_bytes(tm, D, th, x_bytes, c_bytes, single_buffer_weights):
    """Rough resident-VMEM footprint for one configuration."""
    w_buf = 1 if single_buffer_weights else 2
    f = 2 * tm * D * x_bytes            # x tile   (double-buffered over rows)
    f += 2 * tm * D * x_bytes           # out tile (double-buffered over rows)
    f += w_buf * 2 * D * th * c_bytes   # w1 + w2 chunks
    f += w_buf * (th + D) * 4           # b1 chunk + b2
    f += tm * D * (4 + c_bytes)         # f32 accumulator + xn scratch
    f += tm * th * (4 + c_bytes)        # f32 h intermediate + low-prec cast
    return f


@functools.lru_cache(maxsize=None)
def _build_ffn_call(rows_p, tm, D, Hp, th, out_dtype_name, compute_dtype_name,
                    eps, approximate_gelu, vmem_limit_bytes,
                    single_buffer_weights):
    out_dtype = jnp.dtype(out_dtype_name)
    compute_dtype = jnp.dtype(compute_dtype_name)
    n_row = rows_p // tm
    n_h = Hp // th

    # Grid-invariant weights (only possible when n_h == 1) may be
    # single-buffered so they do not take 2x VMEM.
    resident_kwargs = (dict(pipeline_mode=pl.Buffered(1))
                       if single_buffer_weights else {})

    return pl.pallas_call(
        functools.partial(_ffn_kernel, eps=eps, compute_dtype=compute_dtype,
                          approximate_gelu=approximate_gelu),
        out_shape=jax.ShapeDtypeStruct((rows_p, D), out_dtype),
        grid_spec=pltpu.PrefetchScalarGridSpec(
            num_scalar_prefetch=0,
            grid=(n_row, n_h),
            in_specs=[
                pl.BlockSpec((tm, D), lambda i, h: (i, 0)),   # x rows
                pl.BlockSpec((D, th), lambda i, h: (0, h), **resident_kwargs),
                pl.BlockSpec((1, th), lambda i, h: (0, h), **resident_kwargs),
                pl.BlockSpec((th, D), lambda i, h: (h, 0), **resident_kwargs),
                pl.BlockSpec((1, D), lambda i, h: (0, 0), **resident_kwargs),
            ],
            out_specs=pl.BlockSpec((tm, D), lambda i, h: (i, 0)),
            scratch_shapes=[
                pltpu.VMEM((tm, D), compute_dtype),   # xn (LN output, lhs)
                pltpu.VMEM((tm, D), jnp.float32),     # f32 output accumulator
            ],
        ),
        compiler_params=pltpu.CompilerParams(
            # row axis shards across v7x's 2 TCs; H-chunk axis is a reduction.
            dimension_semantics=("parallel", "arbitrary"),
            vmem_limit_bytes=vmem_limit_bytes,
        ),
    )


# --------------------------------------------------------------------------- #
# Public wrapper
# --------------------------------------------------------------------------- #
def feed_forward(x, gamma, beta, w1, b1, w2, b2, *, eps=1e-5, tile_rows=256,
                 compute_dtype=jnp.bfloat16, approximate_gelu=None,
                 hidden_tile=None, vmem_limit_bytes=None):
    """x: (B, N, D) -> (B, N, D).  y = Linear2(GELU(Linear1(LN(x)))) + x.

    D should be a multiple of 128 (lane-dense output stores); H is padded to a
    multiple of 128 internally with zero weights (mathematically a no-op).
    """
    B, N, D = x.shape
    H = w1.shape[1]
    rows = B * N

    if approximate_gelu is None:
        # tanh-GELU (EUP slot) when operands are already low precision: the
        # approximation error (~1e-3) is below bf16 quantisation noise and it
        # keeps v6e/v7x MXU-bound.  Exact erf (nn.GELU default) for f32.
        approximate_gelu = jnp.dtype(compute_dtype).itemsize < 4

    if vmem_limit_bytes is None:
        vmem_limit_bytes = _default_vmem_limit_bytes()

    x_bytes = jnp.dtype(x.dtype).itemsize
    c_bytes = jnp.dtype(compute_dtype).itemsize
    sublane = 16 if x_bytes == 2 else 8

    # ---- row tiling: >=2 (even) grid steps for v7x's 2 TCs, minimal padding --
    target = max(int(tile_rows), sublane)
    n_row = max(_cdiv(rows, target), 1)
    if rows > sublane:
        n_row = max(n_row, 2)
    if n_row > 1 and n_row % 2:
        n_row += 1
    tm = _round_up(_cdiv(rows, n_row), sublane)
    rows_p = tm * n_row

    # ---- H chunking: fit weights + (tm, th) f32 intermediate in VMEM budget --
    buf1 = _buffered1_supported()
    H128 = _round_up(H, 128)
    budget = int(0.85 * vmem_limit_bytes)
    if hidden_tile is not None:
        th = min(_round_up(int(hidden_tile), 128), H128)
        n_h = _cdiv(H128, th)
    else:
        n_h = 1
        while True:
            th = _round_up(_cdiv(H128, n_h), 128)
            fits = _vmem_bytes(tm, D, th, x_bytes, c_bytes,
                               buf1 and n_h == 1) <= budget
            if fits or th <= 128:
                break
            n_h += 1
    Hp = th * n_h

    # ---- host-side prep (pad rows, fold LN affine, cast weights once) -------
    x2 = x.reshape(rows, D)
    if rows_p != rows:
        # Padded rows stay finite through LN (var==0 -> xn==0) and are sliced
        # off after the kernel.
        x2 = jnp.pad(x2, ((0, rows_p - rows), (0, 0)))

    # Fold LayerNorm's gamma/beta into Linear1:
    #   (xn*gamma + beta) @ w1 + b1 == xn @ (gamma[:,None]*w1) + (beta @ w1 + b1)
    w1f = w1.astype(jnp.float32) * gamma.astype(jnp.float32)[:, None]
    b1f = b1.astype(jnp.float32) + beta.astype(jnp.float32) @ w1.astype(jnp.float32)

    w1c = w1f.astype(compute_dtype)        # cast once; halves DMA + VMEM bytes
    w2c = w2.astype(compute_dtype)
    b1r = b1f.reshape(1, H)
    b2r = b2.astype(jnp.float32).reshape(1, D)

    if Hp != H:
        # Zero-padded hidden units: gelu(0)=0 times zero w2 rows -> no effect.
        w1c = jnp.pad(w1c, ((0, 0), (0, Hp - H)))
        b1r = jnp.pad(b1r, ((0, 0), (0, Hp - H)))
        w2c = jnp.pad(w2c, ((0, Hp - H), (0, 0)))

    call = _build_ffn_call(
        rows_p, tm, D, Hp, th,
        jnp.dtype(x.dtype).name, jnp.dtype(compute_dtype).name,
        float(eps), bool(approximate_gelu), int(vmem_limit_bytes),
        bool(buf1 and n_h == 1))

    out = call(x2, w1c, b1r, w2c, b2r)
    if rows_p != rows:
        out = out[:rows]
    return out.reshape(B, N, D)


# --------------------------------------------------------------------------- #
# Reference + self-test
# --------------------------------------------------------------------------- #
def _reference(x, gamma, beta, w1, b1, w2, b2, eps=1e-5, approximate_gelu=False):
    xf = x.astype(jnp.float32)
    mean = jnp.mean(xf, axis=-1, keepdims=True)
    var = jnp.mean((xf - mean) ** 2, axis=-1, keepdims=True)
    xn = (xf - mean) * lax.rsqrt(var + eps) * gamma + beta
    h = xn @ w1 + b1
    if approximate_gelu:
        c = 0.7978845608028654
        h = 0.5 * h * (1.0 + jnp.tanh(c * (h + 0.044715 * h * h * h)))
    else:
        h = 0.5 * h * (1.0 + lax.erf(h / jnp.sqrt(2.0)))
    y = h @ w2 + b2
    return (y + xf).astype(x.dtype)


if __name__ == "__main__":
    # Small but lane-dense shapes (last dim a multiple of 128).
    B, N, D, H = 2, 16, 128, 256   # batch, tokens, dim, hidden_dim

    key = jax.random.PRNGKey(0)
    kx, k1, k2, k3, k4, k5, k6 = jax.random.split(key, 7)

    x = jax.random.normal(kx, (B, N, D), dtype=jnp.float32)
    gamma = 1.0 + 0.1 * jax.random.normal(k5, (D,), jnp.float32)
    beta = 0.1 * jax.random.normal(k6, (D,), jnp.float32)
    w1 = jax.random.normal(k1, (D, H), jnp.float32) * 0.05
    b1 = jax.random.normal(k2, (H,), jnp.float32) * 0.01
    w2 = jax.random.normal(k3, (H, D), jnp.float32) * 0.05
    b2 = jax.random.normal(k4, (D,), jnp.float32) * 0.01

    ref_exact = _reference(x, gamma, beta, w1, b1, w2, b2)
    ref_tanh = _reference(x, gamma, beta, w1, b1, w2, b2, approximate_gelu=True)

    # 1) Default fast path: bf16 operands, tanh-GELU (EUP), f32 accumulation.
    out = jax.block_until_ready(feed_forward(x, gamma, beta, w1, b1, w2, b2))
    assert out.shape == (B, N, D)
    assert jnp.allclose(out, ref_tanh, atol=5e-2, rtol=5e-2), "bf16 path mismatch"
    assert jnp.allclose(out, ref_exact, atol=5e-2, rtol=5e-2), "bf16 vs exact GELU"

    # 2) Full-f32 compute + exact erf GELU: tight check vs nn.GELU semantics.
    out32 = jax.block_until_ready(
        feed_forward(x, gamma, beta, w1, b1, w2, b2, compute_dtype=jnp.float32))
    assert jnp.allclose(out32, ref_exact, atol=2e-3, rtol=2e-3), "f32 path mismatch"

    # 3) Ragged rows: exercises pad-to-tile + multi-step row grid.
    xr = x[:, :15, :]                                   # B*N = 30 rows
    outr = jax.block_until_ready(
        feed_forward(xr, gamma, beta, w1, b1, w2, b2, tile_rows=16))
    refr = _reference(xr, gamma, beta, w1, b1, w2, b2, approximate_gelu=True)
    assert outr.shape == xr.shape
    assert jnp.allclose(outr, refr, atol=5e-2, rtol=5e-2), "ragged path mismatch"

    # 4) Forced H-tiling (two 'arbitrary' grid steps): exercises the
    #    accumulate-over-H path used when weights do not fit the VMEM budget.
    outh = jax.block_until_ready(
        feed_forward(x, gamma, beta, w1, b1, w2, b2, compute_dtype=jnp.float32,
                     hidden_tile=128))
    assert jnp.allclose(outh, ref_exact, atol=2e-3, rtol=2e-3), "H-tiled mismatch"

    print("KERNEL_OK")
</pallas_src>

<mosaic_0001>
module attributes {stable_mosaic.version = 11 : i64} {
  func.func @_copy(%arg0: i32, %arg1: memref<8x128xf32, #tpu.memory_space<vmem>>, %arg2: memref<8x128xf32, #tpu.memory_space<vmem>>) attributes {dimension_semantics = [#tpu.dimension_semantics<arbitrary>], iteration_bounds = array<i64: 1>, scalar_prefetch = 0 : i64, scratch_operands = 0 : i64, tpu.core_type = #tpu.core_type<tc>, window_params = [{pipeline_mode = #tpu.pipeline_mode<synchronous>, transform_indices = @transform_0, window_bounds = array<i64: 8, 128>}, {pipeline_mode = #tpu.pipeline_mode<synchronous>, transform_indices = @transform_1, window_bounds = array<i64: 8, 128>}]} {
    %c0 = arith.constant 0 : index
    %c0_0 = arith.constant 0 : index
    %0 = vector.load %arg1[%c0, %c0_0] : memref<8x128xf32, #tpu.memory_space<vmem>>, vector<8x128xf32>
    %cst = arith.constant 1.000000e+00 : f32
    %1 = vector.broadcast %cst : f32 to vector<8x128xf32>
    %2 = arith.addf %0, %1 : vector<8x128xf32>
    %c0_1 = arith.constant 0 : index
    %c0_2 = arith.constant 0 : index
    %3 = vector.load %arg2[%c0_1, %c0_2] : memref<8x128xf32, #tpu.memory_space<vmem>>, vector<8x128xf32>
    tpu.vector_store %arg2[%c0_1, %c0_2], %2 {strides = array<i32>} : memref<8x128xf32, #tpu.memory_space<vmem>>, vector<8x128xf32>,
    return
  }
  func.func @transform_0(%arg0: i32) -> (i32, i32) {
    %c0_i32 = arith.constant 0 : i32
    %c0_i32_0 = arith.constant 0 : i32
    %c0_i32_1 = arith.constant 0 : i32
    return %c0_i32, %c0_i32_0 : i32, i32
  }
  func.func @transform_1(%arg0: i32) -> (i32, i32) {
    %c0_i32 = arith.constant 0 : i32
    %c0_i32_0 = arith.constant 0 : i32
    %c0_i32_1 = arith.constant 0 : i32
    return %c0_i32, %c0_i32_0 : i32, i32
  }
}

module attributes {stable_mosaic.version = 11 : i64} {
  func.func @_ffn_kernel(%arg0: i32, %arg1: i32, %arg2: memref<16x128xf32, #tpu.memory_space<vmem>>, %arg3: memref<128x256xbf16, #tpu.memory_space<vmem>>, %arg4: memref<1x256xf32, #tpu.memory_space<vmem>>, %arg5: memref<256x128xbf16, #tpu.memory_space<vmem>>, %arg6: memref<1x128xf32, #tpu.memory_space<vmem>>, %arg7: memref<16x128xf32, #tpu.memory_space<vmem>>, %arg8: memref<16x128xbf16, #tpu.memory_space<vmem>>, %arg9: memref<16x128xf32, #tpu.memory_space<vmem>>) attributes {dimension_semantics = [#tpu.dimension_semantics<parallel>, #tpu.dimension_semantics<arbitrary>], iteration_bounds = array<i64: 2, 1>, scalar_prefetch = 0 : i64, scratch_operands = 2 : i64, tpu.core_type = #tpu.core_type<tc>, window_params = [{transform_indices = @transform_0, window_bounds = array<i64: 16, 128>}, {transform_indices = @transform_1, window_bounds = array<i64: 128, 256>}, {transform_indices = @transform_2, window_bounds = array<i64: 1, 256>}, {transform_indices = @transform_3, window_bounds = array<i64: 256, 128>}, {pipeline_mode = #tpu.pipeline_mode<synchronous>, transform_indices = @transform_4, window_bounds = array<i64: 1, 128>}, {transform_indices = @transform_5, window_bounds = array<i64: 16, 128>}]} {
    %c0_i32 = arith.constant 0 : i32
    %0 = arith.cmpi eq, %arg1, %c0_i32 : i32
    %1 = arith.extui %0 : i1 to i32
    %c0_i32_0 = arith.constant 0 : i32
    %2 = arith.cmpi ne, %1, %c0_i32_0 : i32
    scf.if %2 {
      %c0_19 = arith.constant 0 : index
      %c0_20 = arith.constant 0 : index
      %31 = vector.load %arg2[%c0_19, %c0_20] : memref<16x128xf32, #tpu.memory_space<vmem>>, vector<16x128xf32>
      %cst_21 = arith.constant dense<0.000000e+00> : vector<16xf32>
      %32 = vector.multi_reduction <add>, %31, %cst_21 [1] : vector<16x128xf32> to vector<16xf32>
      %33 = vector.shape_cast %32 : vector<16xf32> to vector<16x1xf32>
      %cst_22 = arith.constant 1.280000e+02 : f32
      %34 = vector.broadcast %cst_22 : f32 to vector<16x1xf32>
      %35 = arith.divf %33, %34 : vector<16x1xf32>
      %36 = vector.broadcast %35 : vector<16x1xf32> to vector<16x128xf32>
      %37 = arith.subf %31, %36 : vector<16x128xf32>
      %38 = arith.mulf %37, %37 : vector<16x128xf32>
      %cst_23 = arith.constant dense<0.000000e+00> : vector<16xf32>
      %39 = vector.multi_reduction <add>, %38, %cst_23 [1] : vector<16x128xf32> to vector<16xf32>
      %40 = vector.shape_cast %39 : vector<16xf32> to vector<16x1xf32>
      %cst_24 = arith.constant 1.280000e+02 : f32
      %41 = vector.broadcast %cst_24 : f32 to vector<16x1xf32>
      %42 = arith.divf %40, %41 : vector<16x1xf32>
      %cst_25 = arith.constant 9.99999974E-6 : f32
      %43 = vector.broadcast %cst_25 : f32 to vector<16x1xf32>
      %44 = arith.addf %42, %43 : vector<16x1xf32>
      %45 = math.rsqrt %44 : vector<16x1xf32>
      %46 = vector.broadcast %45 : vector<16x1xf32> to vector<16x128xf32>
      %47 = arith.mulf %37, %46 : vector<16x128xf32>
      %48 = arith.truncf %47 : vector<16x128xf32> to vector<16x128xbf16>
      %c0_26 = arith.constant 0 : index
      %c0_27 = arith.constant 0 : index
      %49 = vector.load %arg8[%c0_26, %c0_27] : memref<16x128xbf16, #tpu.memory_space<vmem>>, vector<16x128xbf16>
      tpu.vector_store %arg8[%c0_26, %c0_27], %48 {strides = array<i32>} : memref<16x128xbf16, #tpu.memory_space<vmem>>, vector<16x128xbf16>,
      %cst_28 = arith.constant 0.000000e+00 : f32
      %50 = vector.broadcast %cst_28 : f32 to vector<16x128xf32>
      %c0_29 = arith.constant 0 : index
      %c0_30 = arith.constant 0 : index
      %51 = vector.load %arg9[%c0_29, %c0_30] : memref<16x128xf32, #tpu.memory_space<vmem>>, vector<16x128xf32>
      tpu.vector_store %arg9[%c0_29, %c0_30], %50 {strides = array<i32>} : memref<16x128xf32, #tpu.memory_space<vmem>>, vector<16x128xf32>,
    } else {
    }
    %c0 = arith.constant 0 : index
    %c0_1 = arith.constant 0 : index
    %3 = vector.load %arg8[%c0, %c0_1] : memref<16x128xbf16, #tpu.memory_space<vmem>>, vector<16x128xbf16>
    %c0_2 = arith.constant 0 : index
    %c0_3 = arith.constant 0 : index
    %4 = vector.load %arg3[%c0_2, %c0_3] : memref<128x256xbf16, #tpu.memory_space<vmem>>, vector<128x256xbf16>
    %cst = arith.constant dense<0.000000e+00> : vector<16x256xf32>
    %5 = tpu.matmul %3, %4, %cst {dimension_numbers = #tpu.dot_dimension_numbers<[1], [0], [0], [1], [0, 0, 1, 1], [], []>} : vector<16x128xbf16>, vector<128x256xbf16>, vector<16x256xf32> -> vector<16x256xf32>
    %c0_4 = arith.constant 0 : index
    %c0_5 = arith.constant 0 : index
    %6 = vector.load %arg4[%c0_4, %c0_5] : memref<1x256xf32, #tpu.memory_space<vmem>>, vector<1x256xf32>
    %7 = vector.broadcast %6 : vector<1x256xf32> to vector<16x256xf32>
    %8 = arith.addf %5, %7 : vector<16x256xf32>
    %cst_6 = arith.constant 5.000000e-01 : f32
    %9 = vector.broadcast %cst_6 : f32 to vector<16x256xf32>
    %10 = arith.mulf %9, %8 : vector<16x256xf32>
    %11 = arith.mulf %8, %8 : vector<16x256xf32>
    %12 = arith.mulf %11, %8 : vector<16x256xf32>
    %cst_7 = arith.constant 4.471500e-02 : f32
    %13 = vector.broadcast %cst_7 : f32 to vector<16x256xf32>
    %14 = arith.mulf %13, %12 : vector<16x256xf32>
    %15 = arith.addf %8, %14 : vector<16x256xf32>
    %cst_8 = arith.constant 0.797884583 : f32
    %16 = vector.broadcast %cst_8 : f32 to vector<16x256xf32>
    %17 = arith.mulf %16, %15 : vector<16x256xf32>
    %18 = math.tanh %17 : vector<16x256xf32>
    %cst_9 = arith.constant 1.000000e+00 : f32
    %19 = vector.broadcast %cst_9 : f32 to vector<16x256xf32>
    %20 = arith.addf %19, %18 : vector<16x256xf32>
    %21 = arith.mulf %10, %20 : vector<16x256xf32>
    %c0_10 = arith.constant 0 : index
    %c0_11 = arith.constant 0 : index
    %22 = vector.load %arg9[%c0_10, %c0_11] : memref<16x128xf32, #tpu.memory_space<vmem>>, vector<16x128xf32>
    %23 = arith.truncf %21 : vector<16x256xf32> to vector<16x256xbf16>
    %c0_12 = arith.constant 0 : index
    %c0_13 = arith.constant 0 : index
    %24 = vector.load %arg5[%c0_12, %c0_13] : memref<256x128xbf16, #tpu.memory_space<vmem>>, vector<256x128xbf16>
    %cst_14 = arith.constant dense<0.000000e+00> : vector<16x128xf32>
    %25 = tpu.matmul %23, %24, %cst_14 {dimension_numbers = #tpu.dot_dimension_numbers<[1], [0], [0], [1], [0, 0, 1, 1], [], []>} : vector<16x256xbf16>, vector<256x128xbf16>, vector<16x128xf32> -> vector<16x128xf32>
    %26 = arith.addf %22, %25 : vector<16x128xf32>
    %c0_15 = arith.constant 0 : index
    %c0_16 = arith.constant 0 : index
    %27 = vector.load %arg9[%c0_15, %c0_16] : memref<16x128xf32, #tpu.memory_space<vmem>>, vector<16x128xf32>
    tpu.vector_store %arg9[%c0_15, %c0_16], %26 {strides = array<i32>} : memref<16x128xf32, #tpu.memory_space<vmem>>, vector<16x128xf32>,
    %c0_i32_17 = arith.constant 0 : i32
    %28 = arith.cmpi eq, %arg1, %c0_i32_17 : i32
    %29 = arith.extui %28 : i1 to i32
    %c0_i32_18 = arith.constant 0 : i32
    %30 = arith.cmpi ne, %29, %c0_i32_18 : i32
    scf.if %30 {
      %c0_19 = arith.constant 0 : index
      %c0_20 = arith.constant 0 : index
      %31 = vector.load %arg9[%c0_19, %c0_20] : memref<16x128xf32, #tpu.memory_space<vmem>>, vector<16x128xf32>
      %c0_21 = arith.constant 0 : index
      %c0_22 = arith.constant 0 : index
      %32 = vector.load %arg6[%c0_21, %c0_22] : memref<1x128xf32, #tpu.memory_space<vmem>>, vector<1x128xf32>
      %33 = vector.broadcast %32 : vector<1x128xf32> to vector<16x128xf32>
      %34 = arith.addf %31, %33 : vector<16x128xf32>
      %c0_23 = arith.constant 0 : index
      %c0_24 = arith.constant 0 : index
      %35 = vector.load %arg2[%c0_23, %c0_24] : memref<16x128xf32, #tpu.memory_space<vmem>>, vector<16x128xf32>
      %36 = arith.addf %34, %35 : vector<16x128xf32>
      %c0_25 = arith.constant 0 : index
      %c0_26 = arith.constant 0 : index
      %37 = vector.load %arg7[%c0_25, %c0_26] : memref<16x128xf32, #tpu.memory_space<vmem>>, vector<16x128xf32>
      tpu.vector_store %arg7[%c0_25, %c0_26], %36 {strides = array<i32>} : memref<16x128xf32, #tpu.memory_space<vmem>>, vector<16x128xf32>,
    } else {
    }
    return
  }
  func.func @transform_0(%arg0: i32, %arg1: i32) -> (i32, i32) {
    %c0_i32 = arith.constant 0 : i32
    %c0_i32_0 = arith.constant 0 : i32
    return %arg0, %c0_i32 : i32, i32
  }
  func.func @transform_1(%arg0: i32, %arg1: i32) -> (i32, i32) {
    %c0_i32 = arith.constant 0 : i32
    %c0_i32_0 = arith.constant 0 : i32
    return %c0_i32, %arg1 : i32, i32
  }
  func.func @transform_2(%arg0: i32, %arg1: i32) -> (i32, i32) {
    %c0_i32 = arith.constant 0 : i32
    %c0_i32_0 = arith.constant 0 : i32
    return %c0_i32, %arg1 : i32, i32
  }
  func.func @transform_3(%arg0: i32, %arg1: i32) -> (i32, i32) {
    %c0_i32 = arith.constant 0 : i32
    %c0_i32_0 = arith.constant 0 : i32
    return %arg1, %c0_i32 : i32, i32
  }
  func.func @transform_4(%arg0: i32, %arg1: i32) -> (i32, i32) {
    %c0_i32 = arith.constant 0 : i32
    %c0_i32_0 = arith.constant 0 : i32
    %c0_i32_1 = arith.constant 0 : i32
    return %c0_i32, %c0_i32_0 : i32, i32
  }
  func.func @transform_5(%arg0: i32, %arg1: i32) -> (i32, i32) {
    %c0_i32 = arith.constant 0 : i32
    %c0_i32_0 = arith.constant 0 : i32
    return %arg0, %c0_i32 : i32, i32
  }
}

</mosaic_0001>

<bundles_post_ra>
// kernel: tpu_custom_call.1
= control target key start
LH: loop header
LB: loop body
LE: loop exit
PB: predicated region body
PF: predicated region fallthrough
CT: control target
= control target key end

     0   :  { %6 = vsyncpa [#allocation3], 0  ;;  %s115_s0 = inlined_call_operand.hbm [shape: f32[8,128], index: 0, kind: input, shape index: {}]   ;;  %s116_s1 = inlined_call_operand.hbm [shape: f32[8,128], index: 1, kind: output, shape index: {}]  }
   0x1   :  { %7 = vsyncpa [#allocation4], 0  ;;  %s13_s8 = sshll.u32 %s115_s0, 4  ;;  %s97_s9 = smov [#allocation2]   ;;  %s14_s8 = int_to_ptr.hbm [resolvable:$true] %s13_s8 }
   0x2   :  { %s15_s10 = sshll.u32 %s97_s9, 4  ;;  %s16_s10 = int_to_ptr.vmem [resolvable:$true] %s15_s10 }
   0x3   :  { %18 = dma.hbm_to_vmem [thread:$0]  %s14_s8, 128, %s16_s10, [#allocation3]  }
   0x4   :  { %93 = dma.done.wait [#allocation3], 128  }
   0x5   :  { %94 = vsyncadd [#allocation3], 4294967168  ;;  %s98_s11 = smov [#allocation5]   ;;  %s33_s15 = sshll.u32 %s116_s1, 4  ;;  %v23_v0 = vld [vmem:[#allocation2] sm:$0xff]  ;;  %s34_s15 = int_to_ptr.hbm [resolvable:$true] %s33_s15 }
   0x6   :  { %s31_s12 = sshll.u32 %s98_s11, 4  ;;  %v24_v1 = vadd.f32 1.0, %v23_v0  ;;  %s32_s12 = int_to_ptr.vmem [resolvable:$true] %s31_s12 }
   0x8   :  { %25 = vst [vmem:[#allocation5] sm:$0xff] %v24_v1 }
   0x9   :  { %36 = dma.vmem_to_hbm [thread:$0]  %s32_s12, 128, %s34_s15, [#allocation4]  }
   0xa   :  { %95 = dma.done.wait [#allocation4], 128  }
   0xb   :  { %96 = vsyncadd [#allocation4], 4294967168 }
   0xc   :  { %41 = vsyncpa [#allocation3], 1 }
   0xd   :  { %42 = vsyncpa [#allocation4], 1 }

// kernel: tpu_custom_call.1
= control target key start
LH: loop header
LB: loop body
LE: loop exit
PB: predicated region body
PF: predicated region fallthrough
CT: control target
= control target key end

     0   :  { %s1649_s0 = inlined_call_operand.hbm [shape: f32[32,128], index: 0, kind: input, shape index: {}]   ;;  %s1650_s1 = inlined_call_operand.hbm [shape: bf16[128,256], index: 1, kind: input, shape index: {}]   ;;  %s1651_s2 = inlined_call_operand.hbm [shape: f32[1,256], index: 2, kind: input, shape index: {}]   ;;  %s1652_s3 = inlined_call_operand.hbm [shape: bf16[256,128], index: 3, kind: input, shape index: {}]   ;;  %s1653_s4 = inlined_call_operand.vmem [shape: f32[1,128], index: 4, kind: input, shape index: {}]   ;;  %s1654_s5 = inlined_call_operand.hbm [shape: f32[32,128], index: 5, kind: output, shape index: {}]  }
   0x1   :  { %1657 = sst [smem:[#allocation17_spill]] %s1650_s1 }
   0x2   :  { %1658 = sst [smem:[#allocation18_spill]] %s1651_s2 }
   0x3   :  { %1659 = sst [smem:[#allocation19_spill]] %s1652_s3 }
   0x4   :  { %10 = vsyncpa [#allocation5], 0 }
   0x5   :  { %12 = vsyncpa [#allocation5 + $0x1], 0 }
   0x6   :  { %13 = vsyncpa [#allocation8], 0 }
   0x7   :  { %14 = vsyncpa [#allocation11], 0 }
   0x8   :  { %15 = vsyncpa [#allocation6], 0 }
   0x9   :  { %17 = vsyncpa [#allocation6 + $0x1], 0  ;;  %s1439_s18 = smov 0   ;;  %s1441_s19 = smov 0  }
   0xa   :  { %s1443_s20 = smov 0   ;;  %s1445_s21 = smov 0  }
   0xb   :  { %s1447_s22 = smov 0   ;;  %s1449_s23 = smov 0  }
   0xc LB: > { %s879_s24 = sadd.s32 4294967295, %s1397_s23   ;;  %s880_s25 = sadd.s32 4294967294, %s1397_s23   ;;  %s1397_s23 = sphi %s1449_s23, %s23_s23   ;;  %s1393_s22 = sphi %s1447_s22, %s1677_s22   ;;  %s1389_s21 = sphi %s1445_s21, %s1676_s21   ;;  %s1385_s20 = sphi %s1443_s20, %s1675_s20   ;;  %s1381_s19 = sphi %s1441_s19, %s1674_s19   ;;  %s1377_s18 = sphi %s1439_s18, %s1673_s18  }
   0xd   : > { %p55_p0 = scmp.ne.s32.totalorder %s1381_s19, %s1377_s18  ;;  %p1473_p1 = scmp.eq.s32.totalorder %s879_s24, 0 }
   0xe   : > { %p1477_p2 = scmp.eq.s32.totalorder %s879_s24, 1  ;;  %p184_p3 = scmp.eq.s32.totalorder %s880_s25, 1 }
   0xf   : > { %p1483_p4 = por %p1473_p1, %p55_p0  ;;  %p881_p5 = scmp.ge.s32.totalorder %s1397_s23, 1 }
  0x10   : > { %p1488_p6 = por %p184_p3, %p55_p0  ;;  %p191_p7 = scmp.lt.s32.totalorder %s1397_s23, 3 }
  0x11   : > { %s1664_s1 = sld [smem:[#allocation17_spill]]  ;;  %s1399_s9 = smov [#allocation7]  }
  0x12   : > { %p1496_p8 = pnand %p881_p5, %p191_p7  ;;  %s207_s10 = sshll.u32 %s1399_s9, 4  ;;  %s208_s10 = int_to_ptr.vmem [resolvable:$true] %s207_s10 }
  0x13   : > { %p885_p11 = scmp.ge.s32.totalorder %s1397_s23, 2  ;;  %s1667_s2 = sld [smem:[#allocation18_spill]] }
  0x14   : > { %p1088_p9 = pneg %p1496_p8  ;;  %s1655_s15 = smov 128  }
  0x15   : > { %s1656_s16 = smov 8   ;;  %s1402_s17 = smov [#allocation9]  }
  0x16   : > { %p1504_p10 = pnand %p1088_p9, %p1473_p1  ;;  %s224_s24 = sshll.u32 %s1402_s17, 4  ;;  %s225_s24 = int_to_ptr.vmem [resolvable:$true] %s224_s24 }
  0x17   : > { %s205_s7 = sshll.u32 %s1664_s1, 4  ;;  %s1668_s3 = sld [smem:[#allocation19_spill]]  ;;  %s206_s7 = int_to_ptr.hbm [resolvable:$true] %s205_s7 }
  0x18   : > { %1091 = dma.hbm_to_vmem [thread:$0]  (!%p1504_p10), %s206_s7, 2048, %s208_s10, [#allocation8], %s1655_s15, %s1655_s15, %s1656_s16  }
  0x19   : > { %s222_s14 = sshll.u32 %s1667_s2, 4  ;;  %s1403_s9 = smov [#allocation10]   ;;  %s223_s14 = int_to_ptr.hbm [resolvable:$true] %s222_s14 }
  0x1a   : > { %1094 = dma.hbm_to_vmem [thread:$0]  (!%p1504_p10), %s223_s14, 32, %s225_s24, [#allocation8]  }
  0x1b   : > { %s238_s12 = sshll.u32 %s1403_s9, 4  ;;  %s1404_s13 = smov 64   ;;  %s239_s12 = int_to_ptr.vmem [resolvable:$true] %s238_s12 }
  0x1c   : > { %s1405_s7 = smov 4   ;;  %s42_s10 = sadd.s32 1, %s1385_s20 }
  0x1d   : > { %s236_s6 = sshll.u32 %s1668_s3, 4  ;;  %s35_s17 = sadd.s32 1, %s1393_s22  ;;  %s237_s6 = int_to_ptr.hbm [resolvable:$true] %s236_s6 }
  0x1e   : > { %1097 = dma.hbm_to_vmem [thread:$0]  (!%p1504_p10), %s237_s6, 2048, %s239_s12, [#allocation11], %s1404_s13, %s1404_s13, %s1405_s7  }
  0x1f   : > { %p49_p12 = scmp.ne.s32.totalorder %s1385_s20, %s1381_s19  ;;  %p37_p13 = scmp.ge.s32.totalorder %s35_s17, 2 }
  0x20   : > { %p50_p0 = scmp.eq.s32.totalorder %s1397_s23, 0  ;;  %p1109_p5 = scmp.lt.s32.totalorder %s1397_s23, 2 }
  0x21   : > { %p1531_p3 = por %p1477_p2, %p49_p12  ;;  %s1679_s17 = smov (%p37_p13, %s35_s17), 0 }
  0x22   : > { %p1538_p7 = por %p50_p0, %p49_p12  ;;  %s255_s11 = sand.u32 1, %s1385_s20  }
  0x23   : > { %s39_s24 = ssub.s32 %s1393_s22, %s1679_s17  ;;  %s886_s30 = sshll.u32 %s255_s11, 4 }
  0x24   : > { %p40_p9 = scmp.eq.s32.totalorder %s39_s24, 0  ;;  %s1032_s6 = sshll.u32 %s1393_s22, 4 }
  0x25   : > { %s264_s13 = scalar_lea.hbm %s1649_s0, %s1032_s6  ;;  %s259_s7 = scalar_lea.vmem [#allocation4], %s886_s30 }
  0x26   : > { %s1547_s27 = scalar_select %p40_p9, %s1385_s20, %s42_s10  }
  0x27   : > { %s267_s15 = sshll.u32 %s259_s7, 4  ;;  %s265_s16 = sshll.u32 %s264_s13, 4  ;;  %s268_s15 = int_to_ptr.vmem [resolvable:$true] %s267_s15  ;;  %s266_s16 = int_to_ptr.hbm [resolvable:$true] %s265_s16 }
  0x28   : > { %p1099_p2 = pnand %p1109_p5, %p1538_p7  ;;  %s256_s1 = scalar_lea.sflag [#allocation5], %s255_s11 }
  0x29   : > { %s1671_s2 = smov 8   ;;  %s1672_s3 = smov 128  }
  0x2a   : > { %1101 = dma.hbm_to_vmem [thread:$0]  (!%p1099_p2), %s266_s16, 256, %s268_s15, %s256_s1, %s1672_s3, %s1672_s3, %s1671_s2  }
  0x2b   : > { %279 = sbr.rel (%p1496_p8) target bundleno = 644 (0x284), region = 40  ;;  %s1562_s10 = sand.u32 (!%p1496_p8), 1, %s1381_s19  }
  0x2c   : > { %s890_s24 = sshll.u32 (!%p1496_p8), %s1562_s10, 4  ;;  %s282_s30 = scalar_lea.sflag (!%p1496_p8), [#allocation5], %s1562_s10 }
  0x2d   : > { %s285_s14 = scalar_lea.vmem (!%p1496_p8), [#allocation4], %s890_s24 }
  0x30   : > { %1360 = dma.done.wait (%p1483_p4), %s282_s30, 256  }
  0x31   : > { %1362 = vsyncadd (%p1483_p4), %s282_s30, 4294967040 }
  0x32   : > { %1364 = dma.done.wait (%p1473_p1), [#allocation8], 2080  }
  0x33   : > { %1366 = vsyncadd (%p1473_p1), [#allocation8], 4294965216 }
  0x34   : > { %1368 = dma.done.wait (%p1473_p1), [#allocation11], 2048  }
  0x35   : > { %1370 = vsyncadd (%p1473_p1), [#allocation11], 4294965248  ;;  %v1580_v0 = vld [vmem:[%s285_s14] sm:$0xff]  ;;  %v1583_v1 = vld [vmem:[%s285_s14 + $0x8] sm:$0xff]  ;;  %v1406_v2 = vmov 128.0   ;;  %s1066_s3 = sshll.u32 %s1389_s21, 4 }
  0x36   : > { %339 = vadd.xlane.f32.xlu0 %v1580_v0  ;;  %1173 = vrcp.f32 %v1406_v2  ;;  %v957_v17 = vld [vmem:[#allocation7 + $0x70] sm:$0xf]  ;;  %v1049_v18 = vld [vmem:[#allocation7 + $0x74] sm:$0xf0]  ;;  %v1048_v19 = vld [vmem:[#allocation7 + $0x74] sm:$0xf]  ;;  %s759_s8 = scalar_lea.hbm %s1654_s5, %s1066_s3 }
  0x37   : > { %v958_v20 = vor.u32 %v1049_v18, %v957_v17  ;;  %v959_v21 = vld [vmem:[#allocation7 + $0x78] sm:$0xf0]  ;;  %v949_v23 = vld [vmem:[#allocation7 + $0x60] sm:$0xf]  ;;  %v1047_v24 = vld [vmem:[#allocation7 + $0x64] sm:$0xf0] }
  0x38   : > { %v962_v22 = vor.u32 %v1048_v19, %v959_v21  ;;  %v1046_v25 = vld [vmem:[#allocation7 + $0x64] sm:$0xf]  ;;  %v950_v26 = vor.u32 %v1047_v24, %v949_v23  ;;  %v951_v27 = vld [vmem:[#allocation7 + $0x68] sm:$0xf0]  ;;  %v941_v29 = vld [vmem:[#allocation7 + $0x50] sm:$0xf] }
  0x39   : > { %502 = vmatpush.bf16.msra.mxu0 %v958_v20  ;;  %v954_v28 = vor.u32 %v1046_v25, %v951_v27  ;;  %v1045_v30 = vld [vmem:[#allocation7 + $0x54] sm:$0xf0]  ;;  %v1044_v31 = vld [vmem:[#allocation7 + $0x54] sm:$0xf]  ;;  %v943_v33 = vld [vmem:[#allocation7 + $0x58] sm:$0xf0] }
  0x3a   : > { %516 = vmatpush.bf16.msra.mxu1 %v962_v22  ;;  %v942_v32 = vor.u32 %v1045_v30, %v941_v29  ;;  %v946_v34 = vor.u32 %v1044_v31, %v943_v33  ;;  %v933_v35 = vld [vmem:[#allocation7 + $0x40] sm:$0xf]  ;;  %v1043_v36 = vld [vmem:[#allocation7 + $0x44] sm:$0xf0]  ;;  %v1042_v37 = vld [vmem:[#allocation7 + $0x44] sm:$0xf] }
  0x3b   : > { %v934_v38 = vor.u32 %v1043_v36, %v933_v35  ;;  %v935_v39 = vld [vmem:[#allocation7 + $0x48] sm:$0xf0]  ;;  %v925_v41 = vld [vmem:[#allocation7 + $0x30] sm:$0xf]  ;;  %v1041_v42 = vld [vmem:[#allocation7 + $0x34] sm:$0xf0] }
  0x3c   : > { %v1174_v3 = vpop.eup %1173  ;;  %v938_v40 = vor.u32 %v1042_v37, %v935_v39  ;;  %v1040_v43 = vld [vmem:[#allocation7 + $0x34] sm:$0xf]  ;;  %v926_v44 = vor.u32 %v1041_v42, %v925_v41  ;;  %v927_v45 = vld [vmem:[#allocation7 + $0x38] sm:$0xf0]  ;;  %v917_v47 = vld [vmem:[#allocation7 + $0x20] sm:$0xf] }
  0x3d   : > { %v344_v4 = vmul.f32 128.0, %v1174_v3  ;;  %vm348_vm0 = vweird.f32 %v1174_v3  ;;  %503 = vmatpush.bf16.msra.mxu0 %v950_v26  ;;  %v930_v46 = vor.u32 %v1040_v43, %v927_v45  ;;  %v1039_v48 = vld [vmem:[#allocation7 + $0x24] sm:$0xf0]  ;;  %v1038_v49 = vld [vmem:[#allocation7 + $0x24] sm:$0xf]  ;;  %v1057_v29 = vld [vmem:[#allocation10 + $0x38] sm:$0xff] }
  0x3e   : > { %341 = vadd.xlane.f32.xlu0 %v1583_v1  ;;  %517 = vmatpush.bf16.msra.mxu1 %v954_v28  ;;  %v918_v50 = vor.u32 %v1039_v48, %v917_v47  ;;  %v919_v51 = vld [vmem:[#allocation7 + $0x28] sm:$0xf0]  ;;  %v909_v55 = vld [vmem:[#allocation7 + $0x10] sm:$0xf]  ;;  %v1037_v56 = vld [vmem:[#allocation7 + $0x14] sm:$0xf0] }
  0x3f   : > { %v345_v5 = vsub.f32 1.0, %v344_v4  ;;  %v922_v53 = vor.u32 %v1038_v49, %v919_v51  ;;  %v1036_v57 = vld [vmem:[#allocation7 + $0x14] sm:$0xf]  ;;  %v910_v59 = vor.u32 %v1037_v56, %v909_v55  ;;  %v911_v60 = vld [vmem:[#allocation7 + $0x18] sm:$0xf0]  ;;  %698 = vmatpush.bf16.msra.mxu2 %v1057_v29  ;;  %v1055_v33 = vld [vmem:[#allocation10 + $0x28] sm:$0xff] }
  0x40   : > { %v901_v61 = vld [vmem:[#allocation7] sm:$0xf]  ;;  %v914_v62 = vor.u32 %v1036_v57, %v911_v60  ;;  %v1035_v63 = vld [vmem:[#allocation7 + $0x4] sm:$0xf0]  ;;  %v1034_v2 = vld [vmem:[#allocation7 + $0x4] sm:$0xf] }
  0x41   : > { %v346_v6 = vmul.f32 %v1174_v3, %v345_v5  ;;  %504 = vmatpush.bf16.msra.mxu0 %v942_v32  ;;  %v902_v4 = vor.u32 %v1035_v63, %v901_v61  ;;  %v1065_v30 = vld [vmem:[#allocation10 + $0x78] sm:$0xff]  ;;  %v1056_v31 = vld [vmem:[#allocation10 + $0x30] sm:$0xff]  ;;  %v1062_v35 = vld [vmem:[#allocation10 + $0x60] sm:$0xff]  ;;  %s327_s15 = scalar_lea.vmem [#allocation12], %s890_s24  ;;  %s762_s11 = sshll.u32 %s759_s8, 4  ;;  %s763_s11 = int_to_ptr.hbm [resolvable:$true] %s762_s11 }
  0x42   : > { %518 = vmatpush.bf16.msra.mxu1 %v946_v34  ;;  %712 = vmatpush.bf16.msra.mxu3 %v1065_v30  ;;  %v1064_v32 = vld [vmem:[#allocation10 + $0x70] sm:$0xff]  ;;  %v1063_v34 = vld [vmem:[#allocation10 + $0x68] sm:$0xff]  ;;  %v1061_v36 = vld [vmem:[#allocation10 + $0x58] sm:$0xff]  ;;  %s760_s16 = sshll.u32 %s327_s15, 4  ;;  %s748_s21 = scalar_lea.sflag [#allocation6], %s1562_s10  ;;  %s761_s16 = int_to_ptr.vmem [resolvable:$true] %s760_s16 }
  0x43   : > { %v347_v7 = vadd.f32 %v1174_v3, %v346_v6  ;;  %699 = vmatpush.bf16.msra.mxu2 %v1056_v31  ;;  %v1052_v37 = vld [vmem:[#allocation10 + $0x10] sm:$0xff]  ;;  %v1051_v39 = vld [vmem:[#allocation10 + $0x8] sm:$0xff]  ;;  %v410_v41 = vld [vmem:[#allocation9] sm:$0x3]  ;;  %s1321_s6 = sshra.s32 %s763_s11, 4  ;;  %s1327_s7 = scalar_lea.hbm %s1654_s5, 32  ;;  %s1322_s6 = int_to_ptr.hbm [resolvable:$true] %s1321_s6 }
  0x44   : > { %v1050_v42 = vld [vmem:[#allocation10] sm:$0xff]  ;;  %v413_v45 = vperm.slane %v410_v41, 1  ;;  %s1323_s9 = scalar_lea.hbm %s1322_s6, 16  ;;  %p1328_p10 = scmp.lt.s32.totalorder %s1322_s6, %s1654_s5 }
  0x45   : > { %v1586_v8 = vsel %vm348_vm0, %v1174_v3, %v347_v7  ;;  %505 = vmatpush.bf16.msra.mxu0 %v934_v38  ;;  %v903_v3 = vld [vmem:[#allocation7 + $0x8] sm:$0xf0]  ;;  %v1060_v38 = vld [vmem:[#allocation10 + $0x50] sm:$0xff]  ;;  %v1058_v43 = vld [vmem:[#allocation10 + $0x40] sm:$0xff]  ;;  %p1324_p1 = scmp.ne.s32.totalorder %s1322_s6, %s1323_s9  ;;  %p1329_p12 = scmp.lt.s32.totalorder %s1327_s7, %s1323_s9 }
  0x46   : > { %519 = vmatpush.bf16.msra.mxu1 %v938_v40  ;;  %v906_v5 = vor.u32 %v1034_v2, %v903_v3  ;;  %713 = vmatpush.bf16.msra.mxu3 %v1064_v32  ;;  %v1059_v40 = vld [vmem:[#allocation10 + $0x48] sm:$0xff] }
  0x47   : > { %700 = vmatpush.bf16.msra.mxu2 %v1055_v33  ;;  %v1172_v33 = vld [vmem:[%s1653_s4] ss:$0 sm:$0xff]  ;;  %p1325_p4 = pnand %p1324_p1, %p1531_p3  ;;  %p1330_p13 = por %p1329_p12, %p1328_p10 }
  0x49   : > { %506 = vmatpush.bf16.msra.mxu0 %v926_v44  ;;  %v412_v44 = vperm.slane %v410_v41, 0  ;;  %p1326_p8 = pneg %p1325_p4 }
  0x4a   : > { %520 = vmatpush.bf16.msra.mxu1 %v930_v46  ;;  %714 = vmatpush.bf16.msra.mxu3 %v1063_v34 }
  0x4b   : > { %p1331_p0 = pnand %p1330_p13, %p1326_p8 }
  0x4d   : > { %507 = vmatpush.bf16.msra.mxu0 %v918_v50 }
  0x4e   : > { %521 = vmatpush.bf16.msra.mxu1 %v922_v53  ;;  %715 = vmatpush.bf16.msra.mxu3 %v1062_v35 }
  0x51   : > { %508 = vmatpush.bf16.msra.mxu0 %v910_v59 }
  0x52   : > { %522 = vmatpush.bf16.msra.mxu1 %v914_v62  ;;  %716 = vmatpush.bf16.msra.mxu3 %v1061_v36 }
  0x55   : > { %509 = vmatpush.bf16.msra.mxu0 %v902_v4 }
  0x56   : > { %523 = vmatpush.bf16.msra.mxu1 %v906_v5  ;;  %717 = vmatpush.bf16.msra.mxu3 %v1060_v38 }
  0x5a   : > { %718 = vmatpush.bf16.msra.mxu3 %v1059_v40 }
  0x5e   : > { %719 = vmatpush.bf16.msra.mxu3 %v1058_v43 }
  0xa9   : > { %v340_v9 = vpop.xlane.xlu0 %339 }
  0xaa   : > { %v350_v10 = vmul.f32 %v1586_v8, %v340_v9 }
  0xac   : > { %v1590_v11 = vsub.f32 %v1580_v0, %v350_v10 }
  0xae   : > { %v354_v12 = vmul.f32 %v1590_v11, %v1590_v11 }
  0xb0   : > { %356 = vadd.xlane.f32.xlu1 %v354_v12 }
  0xb1   : > { %v342_v13 = vpop.xlane.xlu0 %341 }
  0xb2   : > { %v351_v14 = vmul.f32 %v1586_v8, %v342_v13 }
  0xb4   : > { %v1596_v15 = vsub.f32 %v1583_v1, %v351_v14 }
  0xb6   : > { %v355_v16 = vmul.f32 %v1596_v15, %v1596_v15 }
  0xb8   : > { %358 = vadd.xlane.f32.xlu1 %v355_v16 }
 0x123   : > { %v357_v52 = vpop.xlane.xlu1 %356 }
 0x124   : > { %v360_v54 = vmul.f32 %v357_v52, %v1586_v8 }
 0x126   : > { %v362_v58 = vadd.f32 1e-05, %v360_v54 }
 0x128   : > { %1175 = vrsqrt.f32 %v362_v58  ;;  %vm370_vm2 = vweird.f32 %v362_v58 }
 0x12b   : > { %v359_v6 = vpop.xlane.xlu1 %358 }
 0x12c   : > { %v361_v7 = vmul.f32 %v359_v6, %v1586_v8 }
 0x12e   : > { %v1176_v9 = vpop.eup %1175  ;;  %v363_v10 = vadd.f32 1e-05, %v361_v7 }
 0x12f   : > { %v365_v12 = vmul.f32 %v1176_v9, %v362_v58  ;;  %vm371_vm1 = vweird.f32 %v1176_v9 }
 0x130   : > { %1177 = vrsqrt.f32 %v363_v10  ;;  %vm372_vm4 = vmor %vm370_vm2, %vm371_vm1  ;;  %vm380_vm5 = vweird.f32 %v363_v10 }
 0x131   : > { %v366_v13 = vmul.f32 %v1176_v9, %v365_v12 }
 0x133   : > { %v367_v14 = vmul.f32 0.5, %v366_v13 }
 0x135   : > { %v368_v17 = vsub.f32 1.5, %v367_v14 }
 0x136   : > { %v1178_v16 = vpop.eup %1177 }
 0x137   : > { %v375_v18 = vmul.f32 %v1178_v16, %v363_v10  ;;  %v369_v20 = vmul.f32 %v1176_v9, %v368_v17  ;;  %vm381_vm3 = vweird.f32 %v1178_v16 }
 0x138   : > { %vm382_vm6 = vmor %vm380_vm5, %vm381_vm3 }
 0x139   : > { %v376_v19 = vmul.f32 %v1178_v16, %v375_v18  ;;  %v373_v8 = vsel %vm372_vm4, %v1176_v9, %v369_v20 }
 0x13a   : > { %v384_v25 = vmul.f32 %v373_v8, %v1590_v11  ;;  %v1054_v11 = vld [vmem:[#allocation10 + $0x20] sm:$0xff] }
 0x13b   : > { %v377_v21 = vmul.f32 0.5, %v376_v19  ;;  %701 = vmatpush.bf16.msra.mxu2 %v1054_v11 }
 0x13d   : > { %v378_v22 = vsub.f32 1.5, %v377_v21 }
 0x13f   : > { %v379_v23 = vmul.f32 %v1178_v16, %v378_v22 }
 0x141   : > { %v383_v24 = vsel %vm382_vm6, %v1178_v16, %v379_v23 }
 0x142   : > { %v385_v26 = vmul.f32 %v383_v24, %v1596_v15  ;;  %v1053_v15 = vld [vmem:[#allocation10 + $0x18] sm:$0xff] }
 0x143   : > { %702 = vmatpush.bf16.msra.mxu2 %v1053_v15 }
 0x144   : > { %v1070_v27 = vpack.c.bf16 %v385_v26, %v384_v25 }
 0x146   : > { %1071 = vst [vmem:[#allocation2] sm:$0xff] %v1070_v27  }
 0x147   : > { %703 = vmatpush.bf16.msra.mxu2 %v1052_v37 }
 0x14b   : > { %704 = vmatpush.bf16.msra.mxu2 %v1051_v39 }
 0x14d   : > { %v1033_v28 = vld [vmem:[#allocation2] sm:$0xff] }
 0x14e   : > { %510 = vmatmul.bf16.vlgmr.msra.gmra.mxu0 %v1033_v28  ;;  %524 = vmatmul.bf16.vlgmr.msra.gmra.mxu1 %v1033_v28 }
 0x14f   : > { %705 = vmatpush.bf16.msra.mxu2 %v1050_v42 }
 0x1cb   : > { %v511_v46 = vpop.f32.mrf.mxu0  ;;  %v525_v47 = vpop.f32.mrf.mxu1 }
 0x1cc   : > { %v512_v48 = vadd.f32 %v511_v46, %v412_v44  ;;  %v526_v49 = vadd.f32 %v525_v47, %v413_v45 }
 0x1ce   : > { %v534_v50 = vmul.f32 %v512_v48, %v512_v48  ;;  %v535_v51 = vmul.f32 %v526_v49, %v526_v49  ;;  %v530_v21 = vmul.f32 0.5, %v512_v48  ;;  %v531_v23 = vmul.f32 0.5, %v526_v49 }
 0x1d0   : > { %v538_v52 = vmul.f32 %v534_v50, %v512_v48  ;;  %v539_v53 = vmul.f32 %v535_v51, %v526_v49 }
 0x1d2   : > { %v542_v54 = vmul.f32 0.044715, %v538_v52  ;;  %v543_v55 = vmul.f32 0.044715, %v539_v53 }
 0x1d3   : > { %v513_v56 = vpop.f32.mrf.mxu0  ;;  %v527_v57 = vpop.f32.mrf.mxu1 }
 0x1d4   : > { %v514_v58 = vadd.f32 %v513_v56, %v412_v44  ;;  %v528_v59 = vadd.f32 %v527_v57, %v413_v45  ;;  %v546_v60 = vadd.f32 %v542_v54, %v512_v48  ;;  %v547_v61 = vadd.f32 %v543_v55, %v526_v49 }
 0x1d6   : > { %v536_v62 = vmul.f32 %v514_v58, %v514_v58  ;;  %v537_v63 = vmul.f32 %v528_v59, %v528_v59  ;;  %v550_v4 = vmul.f32 0.7978846, %v546_v60  ;;  %v551_v5 = vmul.f32 0.7978846, %v547_v61 }
 0x1d7   : > { %v532_v22 = vmul.f32 0.5, %v514_v58  ;;  %v533_v24 = vmul.f32 0.5, %v528_v59 }
 0x1d8   : > { %v540_v2 = vmul.f32 %v536_v62, %v514_v58  ;;  %v541_v3 = vmul.f32 %v537_v63, %v528_v59  ;;  %1179 = vtanh.f32 %v550_v4 }
 0x1d9   : > { %1181 = vtanh.f32 %v551_v5 }
 0x1da   : > { %v544_v6 = vmul.f32 0.044715, %v540_v2  ;;  %v545_v7 = vmul.f32 0.044715, %v541_v3 }
 0x1dc   : > { %v548_v9 = vadd.f32 %v544_v6, %v514_v58  ;;  %v549_v10 = vadd.f32 %v545_v7, %v528_v59 }
 0x1de   : > { %v552_v12 = vmul.f32 0.7978846, %v548_v9  ;;  %v553_v13 = vmul.f32 0.7978846, %v549_v10  ;;  %v1180_v14 = vpop.eup %1179 }
 0x1df   : > { %v1182_v16 = vpop.eup %1181  ;;  %v558_v17 = vadd.f32 1.0, %v1180_v14 }
 0x1e0   : > { %1183 = vtanh.f32 %v552_v12  ;;  %v559_v19 = vadd.f32 1.0, %v1182_v16 }
 0x1e1   : > { %1185 = vtanh.f32 %v553_v13  ;;  %v562_v26 = vmul.f32 %v558_v17, %v530_v21 }
 0x1e2   : > { %v563_v28 = vmul.f32 %v559_v19, %v531_v23 }
 0x1e6   : > { %v1184_v18 = vpop.eup %1183 }
 0x1e7   : > { %v1186_v20 = vpop.eup %1185  ;;  %v560_v8 = vadd.f32 1.0, %v1184_v18 }
 0x1e8   : > { %v561_v25 = vadd.f32 1.0, %v1186_v20 }
 0x1e9   : > { %v564_v27 = vmul.f32 %v560_v8, %v532_v22 }
 0x1ea   : > { %v565_v29 = vmul.f32 %v561_v25, %v533_v24 }
 0x1eb   : > { %v568_v30 = vpack.c.bf16 %v564_v27, %v562_v26 }
 0x1ec   : > { %v569_v31 = vpack.c.bf16 %v565_v29, %v563_v28 }
 0x1ed   : > { %706 = vmatmul.bf16.vlgmr.msra.gmra.mxu2 %v568_v30 }
 0x1ee   : > { %720 = vmatmul.bf16.vlgmr.msra.gmra.mxu3 %v569_v31 }
 0x270   : > { %v707_v32 = vpop.f32.mrf.mxu2 }
 0x271   : > { %v721_v34 = vpop.f32.mrf.mxu3 }
 0x272   : > { %v722_v11 = vadd.f32 %v721_v34, %v707_v32 }
 0x274   : > { %v739_v35 = vadd.f32 %v1172_v33, %v722_v11 }
 0x276   : > { %v743_v15 = vadd.f32 %v739_v35, %v1580_v0 }
 0x278   : > { %745 = vst [vmem:[%s327_s15] sm:$0xff] %v743_v15  ;;  %v709_v36 = vpop.f32.mrf.mxu2 }
 0x279   : > { %v723_v37 = vpop.f32.mrf.mxu3 }
 0x27a   : > { %v724_v38 = vadd.f32 %v723_v37, %v709_v36 }
 0x27c   : > { %v740_v39 = vadd.f32 %v1172_v33, %v724_v38 }
 0x27e   : > { %v744_v40 = vadd.f32 %v740_v39, %v1583_v1 }
 0x280   : > { %746 = vst [vmem:[%s327_s15 + $0x8] sm:$0xff] %v744_v40 }
 0x281   : > { %1334 = shalt.err (!%p1331_p0)
}
 0x282   : > { %s1407_s10 = smov 128   ;;  %s1408_s14 = smov 8  }
 0x283   : > { %1086 = dma.vmem_to_hbm [thread:$0]  (%p1531_p3), %s761_s16, 256, %s763_s11, %s748_s21, %s1407_s10, %s1407_s10, %s1408_s14  }
 0x284 PF: > { %s777_s1 = sand.u32 1, %s1377_s18   ;;  %p1103_p5 = pnand %p885_p11, %p1488_p6 }
 0x285   : > { %s778_s2 = scalar_lea.sflag [#allocation6], %s777_s1 }
 0x286   : > { %p1104_p7 = pneg %p1103_p5 }
 0x288   : > { %1372 = dma.done.wait (%p1104_p7), %s778_s2, 256  }
 0x289   : > { %1374 = vsyncadd (%p1104_p7), %s778_s2, 4294967040  ;;  %s23_s23 = sadd.s32 1, %s1397_s23   ;;  %s1673_s18 = smov %s1381_s19 }
 0x28a   : > { %p20_p9 = scmp.ge.s32.totalorder %s23_s23, 4   ;;  %s1674_s19 = smov %s1385_s20 }
 0x28b   : > { %s1675_s20 = smov %s1547_s27  ;;  %s1676_s21 = smov %s1393_s22 }
 0x28c   : > { %s1677_s22 = smov %s1679_s17  ;;  %22 = sbr.rel (!%p20_p9) target bundleno = 12 (0xc), region = 108 }
 0x291   :  { %784 = vsyncpa [#allocation5], 1 }
 0x292   :  { %786 = vsyncpa [#allocation5 + $0x1], 1 }
 0x293   :  { %787 = vsyncpa [#allocation8], 1 }
 0x294   :  { %788 = vsyncpa [#allocation11], 1 }
 0x295   :  { %789 = vsyncpa [#allocation6], 1 }
 0x296   :  { %791 = vsyncpa [#allocation6 + $0x1], 1 }

</bundles_post_ra>
